<compile_context>
chip_gen: v5e
topology: v5e:2x2
jax: 0.10.0
libtpu: 0.0.40
codegen_flags: <defaults>
</compile_context>

<pallas_src>
import math

import jax
import jax.numpy as jnp
from jax.experimental import pallas as pl
from jax.experimental.pallas import tpu as pltpu

BN_EPS = 1e-5
LANE = 128


def _round_up(x, m):
    return ((x + m - 1) // m) * m


def _pad2(a, rows, cols):
    r, c = a.shape
    return jnp.pad(a, ((0, rows - r), (0, cols - c)))


# --------------------------------------------------------------------------
# Stage 1: h0 = relu(x @ We + be), tiled over rows.
# --------------------------------------------------------------------------
def _embed_kernel(x_ref, we_ref, be_ref, h0_ref):
    acc = jnp.dot(x_ref[...], we_ref[...], preferred_element_type=jnp.float32)
    acc = jnp.maximum(acc + be_ref[...], 0.0)          # bias + ReLU in f32
    h0_ref[...] = acc.astype(h0_ref.dtype)


# --------------------------------------------------------------------------
# Stage 2: conv #1 -> h1a = BN_a(A @ h0), h1b = BN_b(A2 @ h0)
#          grid = (rows, k-reduction), f32 accumulators in VMEM scratch.
# --------------------------------------------------------------------------
def _conv1_bn_kernel(adj_ref, adj2_ref, h0_ref,
                     scale_a_ref, shift_a_ref, scale_b_ref, shift_b_ref,
                     h1a_ref, h1b_ref, acc_a, acc_b):
    k = pl.program_id(1)

    @pl.when(k == 0)
    def _():
        acc_a[...] = jnp.zeros_like(acc_a)
        acc_b[...] = jnp.zeros_like(acc_b)

    h0 = h0_ref[...]
    acc_a[...] += jnp.dot(adj_ref[...], h0, preferred_element_type=jnp.float32)
    acc_b[...] += jnp.dot(adj2_ref[...], h0, preferred_element_type=jnp.float32)

    @pl.when(k == pl.num_programs(1) - 1)
    def _():
        # BatchNorm1d (eval mode) folded into y = x * scale + shift, per half,
        # done in f32 on the VPU, stored bf16 for the next MXU pass.
        h1a_ref[...] = (acc_a[...] * scale_a_ref[...] +
                        shift_a_ref[...]).astype(h1a_ref.dtype)
        h1b_ref[...] = (acc_b[...] * scale_b_ref[...] +
                        shift_b_ref[...]).astype(h1b_ref.dtype)
    # TODO(synk): dropout layers are identity in eval mode; not implemented.


# --------------------------------------------------------------------------
# Stage 3: conv #2 + JumpingKnowledge('cat') + final projection, without ever
# materializing h2 / jk:
#   out = h0@Wf0 + h1a@Wf1 + h1b@Wf2
#       + (A@h1a)@Wf3 + (A@h1b)@Wf4 + (A2@h1a)@Wf5 + (A2@h1b)@Wf6 + bf
# --------------------------------------------------------------------------
def _conv2_proj_kernel(adj_ref, adj2_ref, h1a_k_ref, h1b_k_ref,
                       h0_row_ref, h1a_row_ref, h1b_row_ref,
                       wf_ref, bf_ref, out_ref,
                       acc_aa, acc_ab, acc_ba, acc_bb):
    k = pl.program_id(1)

    @pl.when(k == 0)
    def _():
        acc_aa[...] = jnp.zeros_like(acc_aa)
        acc_ab[...] = jnp.zeros_like(acc_ab)
        acc_ba[...] = jnp.zeros_like(acc_ba)
        acc_bb[...] = jnp.zeros_like(acc_bb)

    adj = adj_ref[...]
    adj2 = adj2_ref[...]
    h1a = h1a_k_ref[...]
    h1b = h1b_k_ref[...]
    acc_aa[...] += jnp.dot(adj, h1a, preferred_element_type=jnp.float32)
    acc_ab[...] += jnp.dot(adj, h1b, preferred_element_type=jnp.float32)
    acc_ba[...] += jnp.dot(adj2, h1a, preferred_element_type=jnp.float32)
    acc_bb[...] += jnp.dot(adj2, h1b, preferred_element_type=jnp.float32)

    @pl.when(k == pl.num_programs(1) - 1)
    def _():
        f32 = jnp.float32
        # Final projection (negligible FLOPs vs the N^2 aggregations) is done
        # in f32 so the f32 accumulators are not rounded back to bf16.
        out = jnp.dot(h0_row_ref[...].astype(f32), wf_ref[0].astype(f32),
                      preferred_element_type=f32)
        out += jnp.dot(h1a_row_ref[...].astype(f32), wf_ref[1].astype(f32),
                       preferred_element_type=f32)
        out += jnp.dot(h1b_row_ref[...].astype(f32), wf_ref[2].astype(f32),
                       preferred_element_type=f32)
        out += jnp.dot(acc_aa[...], wf_ref[3].astype(f32),
                       preferred_element_type=f32)
        out += jnp.dot(acc_ab[...], wf_ref[4].astype(f32),
                       preferred_element_type=f32)
        out += jnp.dot(acc_ba[...], wf_ref[5].astype(f32),
                       preferred_element_type=f32)
        out += jnp.dot(acc_bb[...], wf_ref[6].astype(f32),
                       preferred_element_type=f32)
        out_ref[...] = out + bf_ref[...]


# --------------------------------------------------------------------------
# Wrapper: padding to lane-dense shapes, bf16 packing, the three pallas_calls.
# --------------------------------------------------------------------------
def h2gcn_forward(x, adj, adj2, params, *, block_m=256, block_k=256):
    n, f = x.shape
    h = params["we"].shape[1]
    c = params["wf"].shape[1]

    f32, bf16 = jnp.float32, jnp.bfloat16

    fp = _round_up(f, LANE)
    hp = _round_up(h, LANE)
    cp = _round_up(c, LANE)
    np_ = _round_up(n, math.lcm(block_m, block_k))
    tm = min(block_m, np_)
    tk = min(block_k, np_)
    grid_m = np_ // tm
    grid_k = np_ // tk

    # ---- pack / pad operands (MXU operands in bf16, epilogue params in f32)
    xp = _pad2(x, np_, fp).astype(bf16)
    adjp = _pad2(adj, np_, np_).astype(bf16)
    adj2p = _pad2(adj2, np_, np_).astype(bf16)
    wep = _pad2(params["we"], fp, hp).astype(bf16)
    bep = _pad2(params["be"], 1, hp).astype(f32)

    # BatchNorm1d(2H) eval-mode fold: y = x*scale + shift, split per half.
    scale = params["gamma"] * jax.lax.rsqrt(params["var"] + BN_EPS)
    shift = params["beta"] - params["mean"] * scale
    scale_a = _pad2(scale[:, :h], 1, hp).astype(f32)
    scale_b = _pad2(scale[:, h:], 1, hp).astype(f32)
    shift_a = _pad2(shift[:, :h], 1, hp).astype(f32)
    shift_b = _pad2(shift[:, h:], 1, hp).astype(f32)

    # Final projection weight split along the JK-concat segments:
    # [h0 | h1a | h1b | A@h1a | A@h1b | A2@h1a | A2@h1b]
    wf = params["wf"]
    wf_packed = jnp.stack(
        [_pad2(wf[j * h:(j + 1) * h], hp, cp) for j in range(7)]).astype(bf16)
    bfp = _pad2(params["bf"], 1, cp).astype(f32)

    vmem_limit = 32 * 1024 * 1024
    cparams_1d = pltpu.CompilerParams(
        dimension_semantics=("parallel",), vmem_limit_bytes=vmem_limit)
    cparams_2d = pltpu.CompilerParams(
        dimension_semantics=("parallel", "arbitrary"),
        vmem_limit_bytes=vmem_limit)

    # ---- stage 1: feature embed + ReLU --------------------------------
    h0 = pl.pallas_call(
        _embed_kernel,
        out_shape=jax.ShapeDtypeStruct((np_, hp), bf16),
        grid=(grid_m,),
        in_specs=[
            pl.BlockSpec((tm, fp), lambda i: (i, 0)),
            pl.BlockSpec((fp, hp), lambda i: (0, 0)),
            pl.BlockSpec((1, hp), lambda i: (0, 0)),
        ],
        out_specs=pl.BlockSpec((tm, hp), lambda i: (i, 0)),
        compiler_params=cparams_1d,
        cost_estimate=pl.CostEstimate(
            flops=2 * np_ * fp * hp,
            transcendentals=0,
            bytes_accessed=np_ * fp * 2 + fp * hp * 2 + np_ * hp * 2),
    )(xp, wep, bep)

    # ---- stage 2: conv #1 (A@h0, A2@h0) + BatchNorm --------------------
    h1a, h1b = pl.pallas_call(
        _conv1_bn_kernel,
        out_shape=(jax.ShapeDtypeStruct((np_, hp), bf16),
                   jax.ShapeDtypeStruct((np_, hp), bf16)),
        grid=(grid_m, grid_k),
        in_specs=[
            pl.BlockSpec((tm, tk), lambda i, k: (i, k)),   # adj tile
            pl.BlockSpec((tm, tk), lambda i, k: (i, k)),   # adj2 tile
            pl.BlockSpec((tk, hp), lambda i, k: (k, 0)),   # h0 (reduction)
            pl.BlockSpec((1, hp), lambda i, k: (0, 0)),    # BN scale (half a)
            pl.BlockSpec((1, hp), lambda i, k: (0, 0)),    # BN shift (half a)
            pl.BlockSpec((1, hp), lambda i, k: (0, 0)),    # BN scale (half b)
            pl.BlockSpec((1, hp), lambda i, k: (0, 0)),    # BN shift (half b)
        ],
        out_specs=(pl.BlockSpec((tm, hp), lambda i, k: (i, 0)),
                   pl.BlockSpec((tm, hp), lambda i, k: (i, 0))),
        scratch_shapes=[pltpu.VMEM((tm, hp), jnp.float32),
                        pltpu.VMEM((tm, hp), jnp.float32)],
        compiler_params=cparams_2d,
        cost_estimate=pl.CostEstimate(
            flops=2 * 2 * np_ * np_ * hp,
            transcendentals=0,
            bytes_accessed=2 * np_ * np_ * 2 + 3 * np_ * hp * 2),
    )(adjp, adj2p, h0, scale_a, shift_a, scale_b, shift_b)

    # ---- stage 3: conv #2 + JK('cat') + final projection ---------------
    out = pl.pallas_call(
        _conv2_proj_kernel,
        out_shape=jax.ShapeDtypeStruct((np_, cp), jnp.float32),
        grid=(grid_m, grid_k),
        in_specs=[
            pl.BlockSpec((tm, tk), lambda i, k: (i, k)),       # adj tile
            pl.BlockSpec((tm, tk), lambda i, k: (i, k)),       # adj2 tile
            pl.BlockSpec((tk, hp), lambda i, k: (k, 0)),       # h1a (reduction)
            pl.BlockSpec((tk, hp), lambda i, k: (k, 0)),       # h1b (reduction)
            pl.BlockSpec((tm, hp), lambda i, k: (i, 0)),       # h0 row tile
            pl.BlockSpec((tm, hp), lambda i, k: (i, 0)),       # h1a row tile
            pl.BlockSpec((tm, hp), lambda i, k: (i, 0)),       # h1b row tile
            pl.BlockSpec((7, hp, cp), lambda i, k: (0, 0, 0)),  # Wf segments
            pl.BlockSpec((1, cp), lambda i, k: (0, 0)),        # final bias
        ],
        out_specs=pl.BlockSpec((tm, cp), lambda i, k: (i, 0)),
        scratch_shapes=[pltpu.VMEM((tm, hp), jnp.float32) for _ in range(4)],
        compiler_params=cparams_2d,
        cost_estimate=pl.CostEstimate(
            flops=2 * (4 * np_ * np_ * hp + 7 * np_ * hp * cp),
            transcendentals=0,
            bytes_accessed=(2 * np_ * np_ * 2 + 5 * np_ * hp * 2 +
                            7 * hp * cp * 2 + np_ * cp * 4)),
    )(adjp, adj2p, h1a, h1b, h0, h1a, h1b, wf_packed, bfp)

    return out[:n, :c]


# --------------------------------------------------------------------------
# Graph / parameter construction + pure-JAX f32 reference.
# --------------------------------------------------------------------------
def build_adjacencies(key, n, num_edges):
    """Dense equivalent of H2GCN.init_adj: normalized 1-hop and strict 2-hop
    adjacencies, no self loops, gcn-normalized without self loops."""
    # TODO(synk): the original uses SparseTensor; here the adjacency is dense
    # (a gather/segment-sum kernel would be needed for truly sparse graphs).
    k1, k2 = jax.random.split(key)
    src = jax.random.randint(k1, (num_edges,), 0, n)
    dst = jax.random.randint(k2, (num_edges,), 0, n)
    A = jnp.zeros((n, n), jnp.float32)
    A = A.at[src, dst].set(1.0)
    A = A.at[dst, src].set(1.0)
    A = A * (1.0 - jnp.eye(n, dtype=jnp.float32))          # remove_diag

    A2 = A @ A                                              # 2-hop counts
    A2 = A2 * (1.0 - jnp.eye(n, dtype=jnp.float32))         # remove_diag
    A2 = A2 - A                                             # strict 2-hop
    A2 = (A2 > 0).astype(jnp.float32)

    def gcn_norm(M):
        deg = M.sum(axis=1)
        dinv = jnp.where(deg > 0, 1.0 / jnp.sqrt(deg), 0.0)
        return dinv[:, None] * M * dinv[None, :]

    return gcn_norm(A), gcn_norm(A2)


def init_params(key, in_channels, hidden, out_channels):
    H = hidden
    ks = jax.random.split(key, 4)
    # feature_embed: MLP(num_mlp_layers=1) == single Linear(in, H)
    we = jax.random.normal(ks[0], (in_channels, H), jnp.float32) * 0.1
    be = jax.random.normal(ks[1], (1, H), jnp.float32) * 0.1
    # BatchNorm1d(2H) fresh-init running stats / affine params
    gamma = jnp.ones((1, 2 * H), jnp.float32)
    beta = jnp.zeros((1, 2 * H), jnp.float32)
    mean = jnp.zeros((1, 2 * H), jnp.float32)
    var = jnp.ones((1, 2 * H), jnp.float32)
    # final_project: Linear(7H, out)
    wf = jax.random.normal(ks[2], (7 * H, out_channels), jnp.float32) * 0.1
    bf = jax.random.normal(ks[3], (1, out_channels), jnp.float32) * 0.1
    return dict(we=we, be=be, gamma=gamma, beta=beta, mean=mean, var=var,
                wf=wf, bf=bf)


def reference_forward(x, adj, adj2, p):
    h0 = jnp.maximum(x @ p["we"] + p["be"], 0.0)
    h1 = jnp.concatenate([adj @ h0, adj2 @ h0], axis=1)
    h1 = (h1 - p["mean"]) / jnp.sqrt(p["var"] + BN_EPS) * p["gamma"] + p["beta"]
    h2 = jnp.concatenate([adj @ h1, adj2 @ h1], axis=1)
    jk = jnp.concatenate([h0, h1, h2], axis=1)
    return jk @ p["wf"] + p["bf"]


if __name__ == "__main__":
    N, IN_C, HIDDEN, OUT_C = 64, 16, 32, 8
    NUM_EDGES = 160

    root = jax.random.PRNGKey(0)
    k_x, k_adj, k_par = jax.random.split(root, 3)

    x = jax.random.normal(k_x, (N, IN_C), jnp.float32)
    adj, adj2 = build_adjacencies(k_adj, N, NUM_EDGES)
    params = init_params(k_par, IN_C, HIDDEN, OUT_C)

    out = h2gcn_forward(x, adj, adj2, params)
    out = jax.block_until_ready(out)
    assert out.shape == (N, OUT_C), out.shape

    # Validate against the f32 reference; adjacencies/activations go through
    # the MXU in bf16 (f32 accumulate), so use a relaxed relative tolerance.
    ref = reference_forward(x, adj, adj2, params)
    err = float(jnp.max(jnp.abs(out - ref)))
    denom = float(jnp.max(jnp.abs(ref)))
    assert err <= 3e-2 * denom + 1e-3, (err, denom)

    print("KERNEL_OK")
</pallas_src>

<mosaic_0001>
module attributes {stable_mosaic.version = 11 : i64} {
  func.func @_embed_kernel(%arg0: i32, %arg1: memref<256x128xbf16, #tpu.memory_space<vmem>>, %arg2: memref<128x128xbf16, #tpu.memory_space<vmem>>, %arg3: memref<1x128xf32, #tpu.memory_space<vmem>>, %arg4: memref<256x128xbf16, #tpu.memory_space<vmem>>) attributes {dimension_semantics = [#tpu.dimension_semantics<parallel>], iteration_bounds = array<i64: 1>, scalar_prefetch = 0 : i64, scratch_operands = 0 : i64, tpu.core_type = #tpu.core_type<tc>, window_params = [{transform_indices = @transform_0, window_bounds = array<i64: 256, 128>}, {pipeline_mode = #tpu.pipeline_mode<synchronous>, transform_indices = @transform_1, window_bounds = array<i64: 128, 128>}, {pipeline_mode = #tpu.pipeline_mode<synchronous>, transform_indices = @transform_2, window_bounds = array<i64: 1, 128>}, {transform_indices = @transform_3, window_bounds = array<i64: 256, 128>}]} {
    %c0 = arith.constant 0 : index
    %c0_0 = arith.constant 0 : index
    %0 = vector.load %arg1[%c0, %c0_0] : memref<256x128xbf16, #tpu.memory_space<vmem>>, vector<256x128xbf16>
    %c0_1 = arith.constant 0 : index
    %c0_2 = arith.constant 0 : index
    %1 = vector.load %arg2[%c0_1, %c0_2] : memref<128x128xbf16, #tpu.memory_space<vmem>>, vector<128x128xbf16>
    %cst = arith.constant dense<0.000000e+00> : vector<256x128xf32>
    %2 = tpu.matmul %0, %1, %cst {dimension_numbers = #tpu.dot_dimension_numbers<[1], [0], [0], [1], [0, 0, 1, 1], [], []>} : vector<256x128xbf16>, vector<128x128xbf16>, vector<256x128xf32> -> vector<256x128xf32>
    %c0_3 = arith.constant 0 : index
    %c0_4 = arith.constant 0 : index
    %3 = vector.load %arg3[%c0_3, %c0_4] : memref<1x128xf32, #tpu.memory_space<vmem>>, vector<1x128xf32>
    %4 = vector.broadcast %3 : vector<1x128xf32> to vector<256x128xf32>
    %5 = arith.addf %2, %4 : vector<256x128xf32>
    %cst_5 = arith.constant 0.000000e+00 : f32
    %6 = vector.broadcast %cst_5 : f32 to vector<256x128xf32>
    %7 = arith.maximumf %5, %6 : vector<256x128xf32>
    %8 = arith.truncf %7 : vector<256x128xf32> to vector<256x128xbf16>
    %c0_6 = arith.constant 0 : index
    %c0_7 = arith.constant 0 : index
    %9 = vector.load %arg4[%c0_6, %c0_7] : memref<256x128xbf16, #tpu.memory_space<vmem>>, vector<256x128xbf16>
    tpu.vector_store %arg4[%c0_6, %c0_7], %8 {strides = array<i32>} : memref<256x128xbf16, #tpu.memory_space<vmem>>, vector<256x128xbf16>,
    return
  }
  func.func @transform_0(%arg0: i32) -> (i32, i32) {
    %c0_i32 = arith.constant 0 : i32
    %c0_i32_0 = arith.constant 0 : i32
    return %arg0, %c0_i32 : i32, i32
  }
  func.func @transform_1(%arg0: i32) -> (i32, i32) {
    %c0_i32 = arith.constant 0 : i32
    %c0_i32_0 = arith.constant 0 : i32
    %c0_i32_1 = arith.constant 0 : i32
    return %c0_i32, %c0_i32_0 : i32, i32
  }
  func.func @transform_2(%arg0: i32) -> (i32, i32) {
    %c0_i32 = arith.constant 0 : i32
    %c0_i32_0 = arith.constant 0 : i32
    %c0_i32_1 = arith.constant 0 : i32
    return %c0_i32, %c0_i32_0 : i32, i32
  }
  func.func @transform_3(%arg0: i32) -> (i32, i32) {
    %c0_i32 = arith.constant 0 : i32
    %c0_i32_0 = arith.constant 0 : i32
    return %arg0, %c0_i32 : i32, i32
  }
}

</mosaic_0001>

<bundles_post_ra>
// kernel: tpu_custom_call.1
= control target key start
LH: loop header
LB: loop body
LE: loop exit
PB: predicated region body
PF: predicated region fallthrough
CT: control target
= control target key end

     0   :  { %8 = vsyncpa [#allocation3], 0  ;;  %s851_s0 = inlined_call_operand.hbm [shape: bf16[256,128], index: 0, kind: input, shape index: {}]   ;;  %s852_s1 = inlined_call_operand.hbm [shape: bf16[128,128], index: 1, kind: input, shape index: {}]   ;;  %s853_s2 = inlined_call_operand.vmem [shape: f32[1,128], index: 2, kind: input, shape index: {}]   ;;  %s854_s3 = inlined_call_operand.hbm [shape: bf16[256,128], index: 3, kind: output, shape index: {}]  }
   0x1   :  { %9 = vsyncpa [#allocation6], 0 }
   0x2   :  { %10 = vsyncpa [#allocation4], 0  ;;  %s15_s14 = sshll.u32 %s851_s0, 4  ;;  %s771_s15 = smov [#allocation2]   ;;  %s16_s14 = int_to_ptr.hbm [resolvable:$true] %s15_s14 }
   0x3   :  { %s17_s16 = sshll.u32 %s771_s15, 4  ;;  %s28_s19 = sshll.u32 %s852_s1, 4  ;;  %s18_s16 = int_to_ptr.vmem [resolvable:$true] %s17_s16  ;;  %s29_s19 = int_to_ptr.hbm [resolvable:$true] %s28_s19 }
   0x4   :  { %s772_s20 = smov 64   ;;  %s773_s21 = smov 4  }
   0x5   :  { %23 = dma.hbm_to_vmem [thread:$0]  %s16_s14, 2048, %s18_s16, [#allocation3], %s772_s20, %s772_s20, %s773_s21  }
   0x6   :  { %s774_s22 = smov [#allocation5]  }
   0x7   :  { %s30_s23 = sshll.u32 %s774_s22, 4  ;;  %s31_s23 = int_to_ptr.vmem [resolvable:$true] %s30_s23 }
   0x8   :  { %36 = dma.hbm_to_vmem [thread:$0]  %s29_s19, 1024, %s31_s23, [#allocation6], %s772_s20, %s772_s20, %s773_s21  }
   0x9   :  { %765 = dma.done.wait [#allocation3], 2048  }
   0xa   :  { %766 = vsyncadd [#allocation3], 4294965248 }
   0xb   :  { %767 = dma.done.wait [#allocation6], 1024  }
   0xc   :  { %768 = vsyncadd [#allocation6], 4294966272  ;;  %v567_v0 = vld [vmem:[#allocation5 + $0x38] sm:$0xff]  ;;  %v566_v1 = vld [vmem:[#allocation5 + $0x30] sm:$0xff]  ;;  %s434_s27 = sshll.u32 %s854_s3, 4  ;;  %s435_s27 = int_to_ptr.hbm [resolvable:$true] %s434_s27 }
   0xd   :  { %243 = vmatpush.bf16.msra.mxu0 %v567_v0  ;;  %663 = vmatpush.bf16.msra.mxu1 %v567_v0  ;;  %v565_v2 = vld [vmem:[#allocation5 + $0x28] sm:$0xff]  ;;  %v564_v3 = vld [vmem:[#allocation5 + $0x20] sm:$0xff]  ;;  %v563_v4 = vld [vmem:[#allocation5 + $0x18] sm:$0xff] }
   0xe   :  { %664 = vmatpush.bf16.msra.mxu2 %v567_v0  ;;  %665 = vmatpush.bf16.msra.mxu3 %v567_v0  ;;  %v562_v5 = vld [vmem:[#allocation5 + $0x10] sm:$0xff]  ;;  %v561_v6 = vld [vmem:[#allocation5 + $0x8] sm:$0xff]  ;;  %v560_v7 = vld [vmem:[#allocation5] sm:$0xff] }
   0xf   :  { %v544_v8 = vld [vmem:[#allocation2] sm:$0xff]  ;;  %v545_v12 = vld [vmem:[#allocation2 + $0x8] sm:$0xff]  ;;  %v546_v16 = vld [vmem:[#allocation2 + $0x10] sm:$0xff] }
  0x10   :  { %v548_v9 = vld [vmem:[#allocation2 + $0x20] sm:$0xff]  ;;  %v549_v13 = vld [vmem:[#allocation2 + $0x28] sm:$0xff]  ;;  %v550_v17 = vld [vmem:[#allocation2 + $0x30] sm:$0xff] }
  0x11   :  { %244 = vmatpush.bf16.msra.mxu0 %v566_v1  ;;  %666 = vmatpush.bf16.msra.mxu1 %v566_v1  ;;  %v552_v10 = vld [vmem:[#allocation2 + $0x40] sm:$0xff]  ;;  %v553_v14 = vld [vmem:[#allocation2 + $0x48] sm:$0xff]  ;;  %v554_v18 = vld [vmem:[#allocation2 + $0x50] sm:$0xff] }
  0x12   :  { %667 = vmatpush.bf16.msra.mxu2 %v566_v1  ;;  %668 = vmatpush.bf16.msra.mxu3 %v566_v1  ;;  %v556_v11 = vld [vmem:[#allocation2 + $0x60] sm:$0xff]  ;;  %v557_v15 = vld [vmem:[#allocation2 + $0x68] sm:$0xff]  ;;  %v558_v19 = vld [vmem:[#allocation2 + $0x70] sm:$0xff] }
  0x13   :  { %v547_v20 = vld [vmem:[#allocation2 + $0x18] sm:$0xff]  ;;  %v811_v26 = vld [vmem:[%s853_s2] ss:$0 sm:$0xff]  ;;  %s775_s2 = smov [#allocation7]  }
  0x14   :  { %v551_v21 = vld [vmem:[#allocation2 + $0x38] sm:$0xff]  ;;  %s432_s24 = sshll.u32 %s775_s2, 4  ;;  %s433_s24 = int_to_ptr.vmem [resolvable:$true] %s432_s24 }
  0x15   :  { %245 = vmatpush.bf16.msra.mxu0 %v565_v2  ;;  %669 = vmatpush.bf16.msra.mxu1 %v565_v2  ;;  %v555_v22 = vld [vmem:[#allocation2 + $0x58] sm:$0xff] }
  0x16   :  { %670 = vmatpush.bf16.msra.mxu2 %v565_v2  ;;  %671 = vmatpush.bf16.msra.mxu3 %v565_v2  ;;  %v559_v23 = vld [vmem:[#allocation2 + $0x78] sm:$0xff] }
  0x19   :  { %246 = vmatpush.bf16.msra.mxu0 %v564_v3  ;;  %672 = vmatpush.bf16.msra.mxu1 %v564_v3 }
  0x1a   :  { %673 = vmatpush.bf16.msra.mxu2 %v564_v3  ;;  %674 = vmatpush.bf16.msra.mxu3 %v564_v3 }
  0x1d   :  { %247 = vmatpush.bf16.msra.mxu0 %v563_v4  ;;  %675 = vmatpush.bf16.msra.mxu1 %v563_v4 }
  0x1e   :  { %676 = vmatpush.bf16.msra.mxu2 %v563_v4  ;;  %677 = vmatpush.bf16.msra.mxu3 %v563_v4 }
  0x21   :  { %248 = vmatpush.bf16.msra.mxu0 %v562_v5  ;;  %678 = vmatpush.bf16.msra.mxu1 %v562_v5 }
  0x22   :  { %679 = vmatpush.bf16.msra.mxu2 %v562_v5  ;;  %680 = vmatpush.bf16.msra.mxu3 %v562_v5 }
  0x25   :  { %249 = vmatpush.bf16.msra.mxu0 %v561_v6  ;;  %681 = vmatpush.bf16.msra.mxu1 %v561_v6 }
  0x26   :  { %682 = vmatpush.bf16.msra.mxu2 %v561_v6  ;;  %683 = vmatpush.bf16.msra.mxu3 %v561_v6 }
  0x29   :  { %250 = vmatpush.bf16.msra.mxu0 %v560_v7  ;;  %684 = vmatpush.bf16.msra.mxu1 %v560_v7 }
  0x2a   :  { %685 = vmatpush.bf16.msra.mxu2 %v560_v7  ;;  %686 = vmatpush.bf16.msra.mxu3 %v560_v7 }
  0x2c   :  { %251 = vmatmul.bf16.vlgmr.msra.gmra.mxu0 %v544_v8  ;;  %271 = vmatmul.bf16.vlgmr.msra.gmra.mxu1 %v548_v9 }
  0x2d   :  { %291 = vmatmul.bf16.vlgmr.msra.gmra.mxu2 %v552_v10  ;;  %311 = vmatmul.bf16.vlgmr.msra.gmra.mxu3 %v556_v11 }
  0x3c   :  { %256 = vmatmul.bf16.gmra.mxu0 %v545_v12  ;;  %276 = vmatmul.bf16.gmra.mxu1 %v549_v13 }
  0x3d   :  { %296 = vmatmul.bf16.gmra.mxu2 %v553_v14  ;;  %316 = vmatmul.bf16.gmra.mxu3 %v557_v15 }
  0x4c   :  { %261 = vmatmul.bf16.gmra.mxu0 %v546_v16  ;;  %281 = vmatmul.bf16.gmra.mxu1 %v550_v17 }
  0x4d   :  { %301 = vmatmul.bf16.gmra.mxu2 %v554_v18  ;;  %321 = vmatmul.bf16.gmra.mxu3 %v558_v19 }
  0x5c   :  { %266 = vmatmul.bf16.gmra.mxu0 %v547_v20  ;;  %286 = vmatmul.bf16.gmra.mxu1 %v551_v21 }
  0x5d   :  { %306 = vmatmul.bf16.gmra.mxu2 %v555_v22  ;;  %326 = vmatmul.bf16.gmra.mxu3 %v559_v23 }
  0xa9   :  { %v252_v24 = vpop.f32.mrf.mxu0  ;;  %v272_v25 = vpop.f32.mrf.mxu1 }
  0xaa   :  { %v253_v27 = vadd.f32 %v811_v26, %v252_v24  ;;  %v273_v28 = vadd.f32 %v811_v26, %v272_v25 }
  0xac   :  { %v332_v35 = vmax.f32 %v253_v27, 0.0  ;;  %v340_v36 = vmax.f32 %v273_v28, 0.0 }
  0xb0   :  { %v292_v29 = vpop.f32.mrf.mxu2  ;;  %v312_v30 = vpop.f32.mrf.mxu3 }
  0xb1   :  { %v254_v31 = vpop.f32.mrf.mxu0  ;;  %v274_v32 = vpop.f32.mrf.mxu1  ;;  %v293_v41 = vadd.f32 %v811_v26, %v292_v29  ;;  %v313_v42 = vadd.f32 %v811_v26, %v312_v30 }
  0xb2   :  { %v255_v33 = vadd.f32 %v811_v26, %v254_v31  ;;  %v275_v34 = vadd.f32 %v811_v26, %v274_v32 }
  0xb3   :  { %v348_v49 = vmax.f32 %v293_v41, 0.0  ;;  %v356_v50 = vmax.f32 %v313_v42, 0.0 }
  0xb4   :  { %v333_v37 = vmax.f32 %v255_v33, 0.0  ;;  %v341_v38 = vmax.f32 %v275_v34, 0.0 }
  0xb6   :  { %v571_v39 = vpack.c.bf16 %v333_v37, %v332_v35  ;;  %v591_v40 = vpack.c.bf16 %v341_v38, %v340_v36 }
  0xb8   :  { %572 = vst [vmem:[#allocation7] sm:$0xff] %v571_v39   ;;  %v294_v43 = vpop.f32.mrf.mxu2  ;;  %v314_v44 = vpop.f32.mrf.mxu3 }
  0xb9   :  { %651 = vst [vmem:[#allocation7 + $0x20] sm:$0xff] %v591_v40   ;;  %v295_v45 = vadd.f32 %v811_v26, %v294_v43  ;;  %v315_v46 = vadd.f32 %v811_v26, %v314_v44  ;;  %v257_v47 = vpop.f32.mrf.mxu0  ;;  %v277_v48 = vpop.f32.mrf.mxu1 }
  0xba   :  { %v258_v55 = vadd.f32 %v811_v26, %v257_v47  ;;  %v278_v56 = vadd.f32 %v811_v26, %v277_v48 }
  0xbb   :  { %v349_v51 = vmax.f32 %v295_v45, 0.0  ;;  %v357_v52 = vmax.f32 %v315_v46, 0.0 }
  0xbc   :  { %v334_v63 = vmax.f32 %v258_v55, 0.0  ;;  %v342_v0 = vmax.f32 %v278_v56, 0.0 }
  0xbd   :  { %v611_v53 = vpack.c.bf16 %v349_v51, %v348_v49  ;;  %v631_v54 = vpack.c.bf16 %v357_v52, %v356_v50 }
  0xbf   :  { %655 = vst [vmem:[#allocation7 + $0x40] sm:$0xff] %v611_v53  }
  0xc0   :  { %659 = vst [vmem:[#allocation7 + $0x60] sm:$0xff] %v631_v54   ;;  %v297_v57 = vpop.f32.mrf.mxu2  ;;  %v317_v58 = vpop.f32.mrf.mxu3 }
  0xc1   :  { %v259_v59 = vpop.f32.mrf.mxu0  ;;  %v279_v60 = vpop.f32.mrf.mxu1  ;;  %v298_v5 = vadd.f32 %v811_v26, %v297_v57  ;;  %v318_v6 = vadd.f32 %v811_v26, %v317_v58 }
  0xc2   :  { %v260_v61 = vadd.f32 %v811_v26, %v259_v59  ;;  %v280_v62 = vadd.f32 %v811_v26, %v279_v60 }
  0xc3   :  { %v350_v13 = vmax.f32 %v298_v5, 0.0  ;;  %v358_v14 = vmax.f32 %v318_v6, 0.0 }
  0xc4   :  { %v335_v1 = vmax.f32 %v260_v61, 0.0  ;;  %v343_v2 = vmax.f32 %v280_v62, 0.0 }
  0xc6   :  { %v576_v3 = vpack.c.bf16 %v335_v1, %v334_v63  ;;  %v596_v4 = vpack.c.bf16 %v343_v2, %v342_v0 }
  0xc8   :  { %648 = vst [vmem:[#allocation7 + $0x8] sm:$0xff] %v576_v3   ;;  %v299_v7 = vpop.f32.mrf.mxu2  ;;  %v319_v8 = vpop.f32.mrf.mxu3 }
  0xc9   :  { %652 = vst [vmem:[#allocation7 + $0x28] sm:$0xff] %v596_v4   ;;  %v300_v9 = vadd.f32 %v811_v26, %v299_v7  ;;  %v320_v10 = vadd.f32 %v811_v26, %v319_v8  ;;  %v262_v11 = vpop.f32.mrf.mxu0  ;;  %v282_v12 = vpop.f32.mrf.mxu1 }
  0xca   :  { %v263_v19 = vadd.f32 %v811_v26, %v262_v11  ;;  %v283_v20 = vadd.f32 %v811_v26, %v282_v12 }
  0xcb   :  { %v351_v15 = vmax.f32 %v300_v9, 0.0  ;;  %v359_v16 = vmax.f32 %v320_v10, 0.0 }
  0xcc   :  { %v336_v28 = vmax.f32 %v263_v19, 0.0  ;;  %v344_v29 = vmax.f32 %v283_v20, 0.0 }
  0xcd   :  { %v616_v17 = vpack.c.bf16 %v351_v15, %v350_v13  ;;  %v636_v18 = vpack.c.bf16 %v359_v16, %v358_v14 }
  0xcf   :  { %656 = vst [vmem:[#allocation7 + $0x48] sm:$0xff] %v616_v17  }
  0xd0   :  { %660 = vst [vmem:[#allocation7 + $0x68] sm:$0xff] %v636_v18   ;;  %v302_v21 = vpop.f32.mrf.mxu2  ;;  %v322_v22 = vpop.f32.mrf.mxu3 }
  0xd1   :  { %v264_v23 = vpop.f32.mrf.mxu0  ;;  %v284_v24 = vpop.f32.mrf.mxu1  ;;  %v303_v34 = vadd.f32 %v811_v26, %v302_v21  ;;  %v323_v35 = vadd.f32 %v811_v26, %v322_v22 }
  0xd2   :  { %v265_v25 = vadd.f32 %v811_v26, %v264_v23  ;;  %v285_v27 = vadd.f32 %v811_v26, %v284_v24 }
  0xd3   :  { %v352_v42 = vmax.f32 %v303_v34, 0.0  ;;  %v360_v43 = vmax.f32 %v323_v35, 0.0 }
  0xd4   :  { %v337_v30 = vmax.f32 %v265_v25, 0.0  ;;  %v345_v31 = vmax.f32 %v285_v27, 0.0 }
  0xd6   :  { %v581_v32 = vpack.c.bf16 %v337_v30, %v336_v28  ;;  %v601_v33 = vpack.c.bf16 %v345_v31, %v344_v29 }
  0xd8   :  { %649 = vst [vmem:[#allocation7 + $0x10] sm:$0xff] %v581_v32   ;;  %v304_v36 = vpop.f32.mrf.mxu2  ;;  %v324_v37 = vpop.f32.mrf.mxu3 }
  0xd9   :  { %653 = vst [vmem:[#allocation7 + $0x30] sm:$0xff] %v601_v33   ;;  %v305_v38 = vadd.f32 %v811_v26, %v304_v36  ;;  %v325_v39 = vadd.f32 %v811_v26, %v324_v37  ;;  %v267_v40 = vpop.f32.mrf.mxu0  ;;  %v287_v41 = vpop.f32.mrf.mxu1 }
  0xda   :  { %v268_v48 = vadd.f32 %v811_v26, %v267_v40  ;;  %v288_v49 = vadd.f32 %v811_v26, %v287_v41 }
  0xdb   :  { %v353_v44 = vmax.f32 %v305_v38, 0.0  ;;  %v361_v45 = vmax.f32 %v325_v39, 0.0 }
  0xdc   :  { %v338_v56 = vmax.f32 %v268_v48, 0.0  ;;  %v346_v57 = vmax.f32 %v288_v49, 0.0 }
  0xdd   :  { %v621_v46 = vpack.c.bf16 %v353_v44, %v352_v42  ;;  %v641_v47 = vpack.c.bf16 %v361_v45, %v360_v43 }
  0xdf   :  { %657 = vst [vmem:[#allocation7 + $0x50] sm:$0xff] %v621_v46  }
  0xe0   :  { %661 = vst [vmem:[#allocation7 + $0x70] sm:$0xff] %v641_v47   ;;  %v307_v50 = vpop.f32.mrf.mxu2  ;;  %v327_v51 = vpop.f32.mrf.mxu3 }
  0xe1   :  { %v269_v52 = vpop.f32.mrf.mxu0  ;;  %v289_v53 = vpop.f32.mrf.mxu1  ;;  %v308_v62 = vadd.f32 %v811_v26, %v307_v50  ;;  %v328_v63 = vadd.f32 %v811_v26, %v327_v51 }
  0xe2   :  { %v270_v54 = vadd.f32 %v811_v26, %v269_v52  ;;  %v290_v55 = vadd.f32 %v811_v26, %v289_v53 }
  0xe3   :  { %v354_v4 = vmax.f32 %v308_v62, 0.0  ;;  %v362_v5 = vmax.f32 %v328_v63, 0.0 }
  0xe4   :  { %v339_v58 = vmax.f32 %v270_v54, 0.0  ;;  %v347_v59 = vmax.f32 %v290_v55, 0.0 }
  0xe6   :  { %v586_v60 = vpack.c.bf16 %v339_v58, %v338_v56  ;;  %v606_v61 = vpack.c.bf16 %v347_v59, %v346_v57 }
  0xe8   :  { %650 = vst [vmem:[#allocation7 + $0x18] sm:$0xff] %v586_v60   ;;  %v309_v0 = vpop.f32.mrf.mxu2  ;;  %v329_v1 = vpop.f32.mrf.mxu3 }
  0xe9   :  { %654 = vst [vmem:[#allocation7 + $0x38] sm:$0xff] %v606_v61   ;;  %v310_v2 = vadd.f32 %v811_v26, %v309_v0  ;;  %v330_v3 = vadd.f32 %v811_v26, %v329_v1 }
  0xeb   :  { %v355_v6 = vmax.f32 %v310_v2, 0.0  ;;  %v363_v7 = vmax.f32 %v330_v3, 0.0 }
  0xed   :  { %v626_v8 = vpack.c.bf16 %v355_v6, %v354_v4  ;;  %v646_v9 = vpack.c.bf16 %v363_v7, %v362_v5 }
  0xef   :  { %658 = vst [vmem:[#allocation7 + $0x58] sm:$0xff] %v626_v8  }
  0xf0   :  { %662 = vst [vmem:[#allocation7 + $0x78] sm:$0xff] %v646_v9  }
  0xf1   :  { %440 = dma.vmem_to_hbm [thread:$0]  %s433_s24, 2048, %s435_s27, [#allocation4], %s772_s20, %s772_s20, %s773_s21  }
  0xf2   :  { %769 = dma.done.wait [#allocation4], 2048  }
  0xf3   :  { %770 = vsyncadd [#allocation4], 4294965248 }
  0xf4   :  { %445 = vsyncpa [#allocation3], 1 }
  0xf5   :  { %446 = vsyncpa [#allocation6], 1 }
  0xf6   :  { %447 = vsyncpa [#allocation4], 1 }

</bundles_post_ra>
